<compile_context>
chip_gen: v7x
topology: tpu7x:2x2x1
jax: 0.10.0
libtpu: 0.0.40
codegen_flags: <defaults>
</compile_context>

<pallas_src>
import jax
import jax.numpy as jnp
from jax.experimental import pallas as pl
from jax.experimental.pallas import tpu as pltpu

LANES = 128


def _round8(n):
    return ((n + 7) // 8) * 8


def _pad2(a, rows, cols):
    a = a.astype(jnp.float32)
    return jnp.pad(a, ((0, rows - a.shape[0]), (0, cols - a.shape[1])))


def _pack_weights(params):
    """All weights -> one (Rw,128) f32 slab (8-row-aligned, zero-padded segments);
       all biases -> one (8,128) f32 slab."""
    (gw1, gb1, gw2, gb2, gw3, gb3, fc1w, fc1b, fc2w, fc2b, fc3w, fc3b) = params
    fc1_out = fc1w.shape[1]
    fc2wa = fc2w[:fc1_out, :]   # multiplies relu(fc1(x))
    fc2wb = fc2w[fc1_out:, :]   # multiplies graph_state  (cat order: x first, gs last)

    segs = [gw1, gw2, gw3, fc1w, fc2wa, fc2wb, fc3w]
    offs, blocks, r = [], [], 0
    for s in segs:
        offs.append(r)
        rr = _round8(s.shape[0])
        blocks.append(_pad2(s, rr, LANES))
        r += rr
    w_slab = jnp.concatenate(blocks, axis=0)                     # (Rw, 128), Rw % 8 == 0

    biases = [gb1, gb2, gb3, fc1b, fc2b, fc3b]
    rows = [_pad2(b.reshape(1, -1), 1, LANES) for b in biases]
    rows.append(jnp.zeros((8 - len(rows), LANES), jnp.float32))
    b_slab = jnp.concatenate(rows, axis=0)                       # (8, 128)
    return w_slab, b_slab, tuple(offs)


def _make_kernel(dims, w_offs, d_offs):
    """Kernel with every (static) dim / slab offset closed over.

    dims = (NR, TBp, IFp, Hp, Gp, NFp, F1p, F2p); all multiples of 8.
    Lane slices use zero-padded segment widths; contractions are exact.
    """
    NR, TBp, IFp, Hp, Gp, NFp, F1p, F2p = dims
    o_gw1, o_gw2, o_gw3, o_fc1, o_fc2a, o_fc2b, o_fc3 = w_offs
    r_adj, r_m, r_feat, r_x = d_offs
    f32 = jnp.float32

    def kernel(data_ref, w_ref, b_ref, out_ref):
        # ---- per-tile data slab (static slices are free) ----
        adj  = data_ref[0, r_adj:r_adj + NR, 0:NR]      # block-diag Â over TB graphs
        madj = data_ref[0, r_m:r_m + TBp, 0:NR]         # per-graph mean-rows(Â), block placed
        feat = data_ref[0, r_feat:r_feat + NR, 0:IFp]   # stacked node features
        x    = data_ref[0, r_x:r_x + TBp, 0:NFp]        # stacked MLP inputs

        # ---- weight slab (8-row-aligned, zero padded to 128 lanes) ----
        gw1   = w_ref[o_gw1:o_gw1 + IFp, 0:Hp]
        gw2   = w_ref[o_gw2:o_gw2 + Hp, 0:Hp]
        gw3   = w_ref[o_gw3:o_gw3 + Hp, 0:Gp]
        fc1w  = w_ref[o_fc1:o_fc1 + NFp, 0:F1p]
        fc2wa = w_ref[o_fc2a:o_fc2a + F1p, 0:F2p]
        fc2wb = w_ref[o_fc2b:o_fc2b + Gp, 0:F2p]
        fc3w  = w_ref[o_fc3:o_fc3 + F2p, :]             # (F2p, 128) zero-padded -> lane-dense out

        # ---- bias slab ----
        gb1  = b_ref[0:1, 0:Hp]
        gb2  = b_ref[1:2, 0:Hp]
        gb3  = b_ref[2:3, 0:Gp]
        fc1b = b_ref[3:4, 0:F1p]
        fc2b = b_ref[4:5, 0:F2p]
        fc3b = b_ref[5:6, :]                            # (1, 128)

        # ---- GCN over TB graphs at once (block-diagonal Â keeps graphs independent) ----
        h = jnp.dot(adj, jnp.dot(feat, gw1, preferred_element_type=f32),
                    preferred_element_type=f32) + gb1
        h = jnp.maximum(h, 0.0)
        h = jnp.dot(adj, jnp.dot(h, gw2, preferred_element_type=f32),
                    preferred_element_type=f32) + gb2
        h = jnp.maximum(h, 0.0)
        # mean_nodes(Â h W3 + b3) == (mean_rows(Â) @ h) @ W3 + b3  (exact fold)
        graph_state = jnp.dot(jnp.dot(madj, h, preferred_element_type=f32),
                              gw3, preferred_element_type=f32) + gb3     # (TBp, Gp)

        # ---- MLP head on TBp stacked rows; fc2(cat(x1, gs)) as split-weight sum ----
        x1 = jnp.maximum(jnp.dot(x, fc1w, preferred_element_type=f32) + fc1b, 0.0)
        x2 = jnp.maximum(jnp.dot(x1, fc2wa, preferred_element_type=f32)
                         + jnp.dot(graph_state, fc2wb, preferred_element_type=f32)
                         + fc2b, 0.0)
        y = jnp.dot(x2, fc3w, preferred_element_type=f32) + fc3b         # (TBp, 128)

        out_ref[0] = y    # full-lane, 8-aligned-row store (no broadcast, no masked vst)

    return kernel


def fc_model_graph_batched(adj_b, feat_b, params, x_b):
    """B independent (graph, x) forwards in one pallas_call.
       adj_b: (B,N,N) normalized Â; feat_b: (B,N,in_feats); x_b: (B,numFeats)."""
    B, N, _ = adj_b.shape
    in_feats = feat_b.shape[-1]
    num_feats = x_b.shape[-1]
    gw1, gw3, fc1w, fc2w, fc3w = params[0], params[4], params[6], params[8], params[10]
    hidden = gw1.shape[1]
    gcn_out = gw3.shape[1]
    fc1_out = fc1w.shape[1]
    fc2_out = fc2w.shape[1]
    out_chs = fc3w.shape[1]

    # TODO(synk): graphs with more than 128 nodes would need a tiled GCN (adjacency no
    # longer fits one 128-lane block); not needed for this model (N is tiny).
    TB = max(1, min(B, LANES // N))       # graphs packed per grid step (TB*N <= 128)
    T = -(-B // TB)                       # grid steps
    Bp = T * TB
    TBp = _round8(TB)
    NR = _round8(TB * N)

    IFp, Hp, Gp = _round8(in_feats), _round8(hidden), _round8(gcn_out)
    NFp, F1p, F2p = _round8(num_feats), _round8(fc1_out), _round8(fc2_out)

    w_slab, b_slab, w_offs = _pack_weights(params)
    Rw = w_slab.shape[0]

    # ---- per-tile data slab: block-diag Â | block mean-rows(Â) | stacked feat | stacked x
    pad_b = Bp - B
    adj_p = jnp.pad(adj_b.astype(jnp.float32),
                    ((0, pad_b), (0, 0), (0, 0))).reshape(T, TB, N, N)
    feat_p = jnp.pad(feat_b.astype(jnp.float32),
                     ((0, pad_b), (0, 0), (0, 0))).reshape(T, TB, N, in_feats)
    x_p = jnp.pad(x_b.astype(jnp.float32),
                  ((0, pad_b), (0, 0))).reshape(T, TB, num_feats)

    eye = jnp.eye(TB, dtype=jnp.float32)
    adj_blk = (adj_p[:, :, None, :, :] * eye[None, :, :, None, None])
    adj_blk = adj_blk.transpose(0, 1, 3, 2, 4).reshape(T, TB * N, TB * N)
    m = jnp.mean(adj_p, axis=2)                                   # mean over node/row axis
    m_blk = (m[:, :, None, :] * eye[None, :, :, None]).reshape(T, TB, TB * N)
    feat_stk = feat_p.reshape(T, TB * N, in_feats)

    r_adj, r_m = 0, NR
    r_feat, r_x = NR + TBp, 2 * NR + TBp
    Rd = 2 * NR + 2 * TBp

    def pad3(a, rows):
        return jnp.pad(a, ((0, 0), (0, rows - a.shape[1]), (0, LANES - a.shape[2])))

    data = jnp.concatenate([
        pad3(adj_blk, NR), pad3(m_blk, TBp), pad3(feat_stk, NR), pad3(x_p, TBp),
    ], axis=1)                                                    # (T, Rd, 128)

    kernel = _make_kernel((NR, TBp, IFp, Hp, Gp, NFp, F1p, F2p),
                          w_offs, (r_adj, r_m, r_feat, r_x))

    flops_per_tile = 2 * (NR * IFp * Hp + 2 * NR * NR * Hp + NR * Hp * Hp
                          + TBp * NR * Hp + TBp * Hp * Gp
                          + TBp * NFp * F1p + TBp * F1p * F2p + TBp * Gp * F2p
                          + TBp * F2p * LANES)
    bytes_accessed = 4 * (T * Rd * LANES + Rw * LANES + 8 * LANES + T * TBp * LANES)

    out = pl.pallas_call(
        kernel,
        out_shape=jax.ShapeDtypeStruct((T, TBp, LANES), jnp.float32),
        grid_spec=pltpu.PrefetchScalarGridSpec(
            num_scalar_prefetch=0,
            grid=(T,),
            in_specs=[
                pl.BlockSpec((1, Rd, LANES), lambda t: (t, 0, 0)),   # per-tile data
                pl.BlockSpec((Rw, LANES), lambda t: (0, 0)),         # weights: resident
                pl.BlockSpec((8, LANES), lambda t: (0, 0)),          # biases: resident
            ],
            out_specs=pl.BlockSpec((1, TBp, LANES), lambda t: (t, 0, 0)),
        ),
        compiler_params=pltpu.CompilerParams(
            # Only split across TensorCores when each core gets substantial work.
            dimension_semantics=(("parallel",) if T >= 4 else ("arbitrary",))),
        cost_estimate=pl.CostEstimate(flops=T * flops_per_tile,
                                      transcendentals=0,
                                      bytes_accessed=bytes_accessed),
    )(data, w_slab, b_slab)

    # (T, TBp, 128) -> keep real rows, slice real batch and channels
    return out[:, :TB, :].reshape(Bp, LANES)[:B, :out_chs]        # (B, outChs)


def fc_model_graph(adj_norm, feat, params, x):
    """Single forward matching FcModelGraph.forward(x, graph). Returns (outChs,)."""
    return fc_model_graph_batched(adj_norm[None], feat[None], params, x[None])[0]


# ---------------- pure-JAX reference (for correctness check) ----------------
def fc_model_graph_reference(adj, feat, params, x):
    (gw1, gb1, gw2, gb2, gw3, gb3, fc1w, fc1b, fc2w, fc2b, fc3w, fc3b) = params
    h = jnp.maximum(adj @ (feat @ gw1) + gb1, 0.0)
    h = jnp.maximum(adj @ (h @ gw2) + gb2, 0.0)
    h = adj @ (h @ gw3) + gb3
    gs = jnp.mean(h, axis=0)                       # dgl.mean_nodes + squeeze
    x1 = jnp.maximum(x @ fc1w + fc1b[0], 0.0)
    xc = jnp.concatenate([x1, gs], axis=0)
    x2 = jnp.maximum(xc @ fc2w + fc2b[0], 0.0)
    return x2 @ fc3w + fc3b[0]


# ---------------- deterministic test data ----------------
def make_params(key, num_feats, out_chs, in_feats=6, hidden=12, gcn_out=4):
    ks = jax.random.split(key, 12)
    s = 0.1

    def w(k, shape):
        return (s * jax.random.normal(k, shape)).astype(jnp.float32)

    gw1 = w(ks[0], (in_feats, hidden));   gb1 = w(ks[1], (1, hidden))
    gw2 = w(ks[2], (hidden, hidden));     gb2 = w(ks[3], (1, hidden))
    gw3 = w(ks[4], (hidden, gcn_out));    gb3 = w(ks[5], (1, gcn_out))
    fc1w = w(ks[6], (num_feats, 32 - 4)); fc1b = w(ks[7], (1, 32 - 4))
    fc2w = w(ks[8], (32, 32));            fc2b = w(ks[9], (1, 32))
    fc3w = w(ks[10], (32, out_chs));      fc3b = w(ks[11], (1, out_chs))
    return (gw1, gb1, gw2, gb2, gw3, gb3, fc1w, fc1b, fc2w, fc2b, fc3w, fc3b)


def make_graph(key, n_nodes, in_feats):
    """Random undirected graph: node features + Â = D^-1/2 (A+I) D^-1/2."""
    kf, ka = jax.random.split(key)
    feat = jax.random.normal(kf, (n_nodes, in_feats), dtype=jnp.float32)
    a = (jax.random.uniform(ka, (n_nodes, n_nodes)) > 0.6).astype(jnp.float32)
    a = jnp.maximum(a, a.T)                                   # symmetric
    a = a * (1.0 - jnp.eye(n_nodes)) + jnp.eye(n_nodes)       # self-loops
    deg = jnp.sum(a, axis=1)
    d_inv_sqrt = 1.0 / jnp.sqrt(deg)
    adj_norm = (d_inv_sqrt[:, None] * a * d_inv_sqrt[None, :]).astype(jnp.float32)
    return adj_norm, feat


if __name__ == "__main__":
    key = jax.random.PRNGKey(0)
    k_params, k_graph, k_x = jax.random.split(key, 3)

    num_feats = 16      # numFeats
    out_chs = 4         # outChs
    n_nodes = 8         # nodes in the graph
    in_feats = 6        # option without 'mtl' -> GCN(6, 12, 4)

    params = make_params(k_params, num_feats, out_chs, in_feats=in_feats)

    # --- single forward, matching FcModelGraph.forward(x, graph) semantics ---
    adj_norm, feat = make_graph(k_graph, n_nodes, in_feats)
    x = jax.random.normal(k_x, (num_feats,), dtype=jnp.float32)
    y = fc_model_graph(adj_norm, feat, params, x)
    jax.block_until_ready(y)
    assert y.shape == (out_chs,)
    y_ref = fc_model_graph_reference(adj_norm, feat, params, x)
    assert bool(jnp.allclose(y, y_ref, atol=1e-4, rtol=1e-4))

    # --- batched path: 20 (graph, x) pairs -> 16 graphs per grid step, 2 grid steps ---
    B = 20
    gkeys = jax.random.split(jax.random.PRNGKey(1), B)
    graphs = [make_graph(k, n_nodes, in_feats) for k in gkeys]
    adj_b = jnp.stack([g[0] for g in graphs])
    feat_b = jnp.stack([g[1] for g in graphs])
    x_b = jax.random.normal(jax.random.PRNGKey(2), (B, num_feats), dtype=jnp.float32)
    y_b = fc_model_graph_batched(adj_b, feat_b, params, x_b)
    jax.block_until_ready(y_b)
    assert y_b.shape == (B, out_chs)
    y_b_ref = jnp.stack([fc_model_graph_reference(adj_b[i], feat_b[i], params, x_b[i])
                         for i in range(B)])
    assert bool(jnp.allclose(y_b, y_b_ref, atol=1e-4, rtol=1e-4))

    print("KERNEL_OK")
</pallas_src>

<mosaic_0001>
module attributes {stable_mosaic.version = 11 : i64} {
  func.func @kernel(%arg0: i32, %arg1: memref<1x32x128xf32, #tpu.memory_space<vmem>>, %arg2: memref<128x128xf32, #tpu.memory_space<vmem>>, %arg3: memref<8x128xf32, #tpu.memory_space<vmem>>, %arg4: memref<1x8x128xf32, #tpu.memory_space<vmem>>) attributes {dimension_semantics = [#tpu.dimension_semantics<arbitrary>], iteration_bounds = array<i64: 1>, scalar_prefetch = 0 : i64, scratch_operands = 0 : i64, tpu.core_type = #tpu.core_type<tc>, window_params = [{transform_indices = @transform_0, window_bounds = array<i64: 1, 32, 128>}, {pipeline_mode = #tpu.pipeline_mode<synchronous>, transform_indices = @transform_1, window_bounds = array<i64: 128, 128>}, {pipeline_mode = #tpu.pipeline_mode<synchronous>, transform_indices = @transform_2, window_bounds = array<i64: 8, 128>}, {transform_indices = @transform_3, window_bounds = array<i64: 1, 8, 128>}]} {
    %c0 = arith.constant 0 : index
    %c0_0 = arith.constant 0 : index
    %c0_1 = arith.constant 0 : index
    %0 = vector.load %arg1[%c0, %c0_0, %c0_1] : memref<1x32x128xf32, #tpu.memory_space<vmem>>, vector<1x8x8xf32>
    %1 = vector.shape_cast %0 : vector<1x8x8xf32> to vector<8x8xf32>
    %c0_2 = arith.constant 0 : index
    %c8 = arith.constant 8 : index
    %c0_3 = arith.constant 0 : index
    %2 = vector.load %arg1[%c0_2, %c8, %c0_3] : memref<1x32x128xf32, #tpu.memory_space<vmem>>, vector<1x8x8xf32>
    %3 = vector.shape_cast %2 : vector<1x8x8xf32> to vector<8x8xf32>
    %c0_4 = arith.constant 0 : index
    %c16 = arith.constant 16 : index
    %c0_5 = arith.constant 0 : index
    %4 = vector.load %arg1[%c0_4, %c16, %c0_5] : memref<1x32x128xf32, #tpu.memory_space<vmem>>, vector<1x8x8xf32>
    %5 = vector.shape_cast %4 : vector<1x8x8xf32> to vector<8x8xf32>
    %c0_6 = arith.constant 0 : index
    %c24 = arith.constant 24 : index
    %c0_7 = arith.constant 0 : index
    %6 = vector.load %arg1[%c0_6, %c24, %c0_7] : memref<1x32x128xf32, #tpu.memory_space<vmem>>, vector<1x8x16xf32>
    %7 = vector.shape_cast %6 : vector<1x8x16xf32> to vector<8x16xf32>
    %c0_8 = arith.constant 0 : index
    %c0_9 = arith.constant 0 : index
    %8 = vector.load %arg2[%c0_8, %c0_9] : memref<128x128xf32, #tpu.memory_space<vmem>>, vector<8x16xf32>
    %c8_10 = arith.constant 8 : index
    %c0_11 = arith.constant 0 : index
    %9 = vector.load %arg2[%c8_10, %c0_11] : memref<128x128xf32, #tpu.memory_space<vmem>>, vector<16x16xf32>
    %c24_12 = arith.constant 24 : index
    %c0_13 = arith.constant 0 : index
    %10 = vector.load %arg2[%c24_12, %c0_13] : memref<128x128xf32, #tpu.memory_space<vmem>>, vector<16x8xf32>
    %c40 = arith.constant 40 : index
    %c0_14 = arith.constant 0 : index
    %11 = vector.load %arg2[%c40, %c0_14] : memref<128x128xf32, #tpu.memory_space<vmem>>, vector<16x32xf32>
    %c56 = arith.constant 56 : index
    %c0_15 = arith.constant 0 : index
    %12 = vector.load %arg2[%c56, %c0_15] : memref<128x128xf32, #tpu.memory_space<vmem>>, vector<32x32xf32>
    %c88 = arith.constant 88 : index
    %c0_16 = arith.constant 0 : index
    %13 = vector.load %arg2[%c88, %c0_16] : memref<128x128xf32, #tpu.memory_space<vmem>>, vector<8x32xf32>
    %c96 = arith.constant 96 : index
    %c0_17 = arith.constant 0 : index
    %14 = vector.load %arg2[%c96, %c0_17] : memref<128x128xf32, #tpu.memory_space<vmem>>, vector<32x128xf32>
    %c0_18 = arith.constant 0 : index
    %c0_19 = arith.constant 0 : index
    %15 = vector.load %arg3[%c0_18, %c0_19] : memref<8x128xf32, #tpu.memory_space<vmem>>, vector<1x16xf32>
    %c1 = arith.constant 1 : index
    %c0_20 = arith.constant 0 : index
    %16 = vector.load %arg3[%c1, %c0_20] : memref<8x128xf32, #tpu.memory_space<vmem>>, vector<1x16xf32>
    %c2 = arith.constant 2 : index
    %c0_21 = arith.constant 0 : index
    %17 = vector.load %arg3[%c2, %c0_21] : memref<8x128xf32, #tpu.memory_space<vmem>>, vector<1x8xf32>
    %c3 = arith.constant 3 : index
    %c0_22 = arith.constant 0 : index
    %18 = vector.load %arg3[%c3, %c0_22] : memref<8x128xf32, #tpu.memory_space<vmem>>, vector<1x32xf32>
    %c4 = arith.constant 4 : index
    %c0_23 = arith.constant 0 : index
    %19 = vector.load %arg3[%c4, %c0_23] : memref<8x128xf32, #tpu.memory_space<vmem>>, vector<1x32xf32>
    %c5 = arith.constant 5 : index
    %c0_24 = arith.constant 0 : index
    %20 = vector.load %arg3[%c5, %c0_24] : memref<8x128xf32, #tpu.memory_space<vmem>>, vector<1x128xf32>
    %cst = arith.constant dense<0.000000e+00> : vector<8x16xf32>
    %21 = tpu.matmul %5, %8, %cst {dimension_numbers = #tpu.dot_dimension_numbers<[1], [0], [0], [1], [0, 0, 1, 1], [], []>} : vector<8x8xf32>, vector<8x16xf32>, vector<8x16xf32> -> vector<8x16xf32>
    %cst_25 = arith.constant dense<0.000000e+00> : vector<8x16xf32>
    %22 = tpu.matmul %1, %21, %cst_25 {dimension_numbers = #tpu.dot_dimension_numbers<[1], [0], [0], [1], [0, 0, 1, 1], [], []>} : vector<8x8xf32>, vector<8x16xf32>, vector<8x16xf32> -> vector<8x16xf32>
    %23 = vector.broadcast %15 : vector<1x16xf32> to vector<8x16xf32>
    %24 = arith.addf %22, %23 : vector<8x16xf32>
    %cst_26 = arith.constant 0.000000e+00 : f32
    %25 = vector.broadcast %cst_26 : f32 to vector<8x16xf32>
    %26 = arith.maximumf %24, %25 : vector<8x16xf32>
    %cst_27 = arith.constant dense<0.000000e+00> : vector<8x16xf32>
    %27 = tpu.matmul %26, %9, %cst_27 {dimension_numbers = #tpu.dot_dimension_numbers<[1], [0], [0], [1], [0, 0, 1, 1], [], []>} : vector<8x16xf32>, vector<16x16xf32>, vector<8x16xf32> -> vector<8x16xf32>
    %cst_28 = arith.constant dense<0.000000e+00> : vector<8x16xf32>
    %28 = tpu.matmul %1, %27, %cst_28 {dimension_numbers = #tpu.dot_dimension_numbers<[1], [0], [0], [1], [0, 0, 1, 1], [], []>} : vector<8x8xf32>, vector<8x16xf32>, vector<8x16xf32> -> vector<8x16xf32>
    %29 = vector.broadcast %16 : vector<1x16xf32> to vector<8x16xf32>
    %30 = arith.addf %28, %29 : vector<8x16xf32>
    %cst_29 = arith.constant 0.000000e+00 : f32
    %31 = vector.broadcast %cst_29 : f32 to vector<8x16xf32>
    %32 = arith.maximumf %30, %31 : vector<8x16xf32>
    %cst_30 = arith.constant dense<0.000000e+00> : vector<8x16xf32>
    %33 = tpu.matmul %3, %32, %cst_30 {dimension_numbers = #tpu.dot_dimension_numbers<[1], [0], [0], [1], [0, 0, 1, 1], [], []>} : vector<8x8xf32>, vector<8x16xf32>, vector<8x16xf32> -> vector<8x16xf32>
    %cst_31 = arith.constant dense<0.000000e+00> : vector<8x8xf32>
    %34 = tpu.matmul %33, %10, %cst_31 {dimension_numbers = #tpu.dot_dimension_numbers<[1], [0], [0], [1], [0, 0, 1, 1], [], []>} : vector<8x16xf32>, vector<16x8xf32>, vector<8x8xf32> -> vector<8x8xf32>
    %35 = vector.broadcast %17 : vector<1x8xf32> to vector<8x8xf32>
    %36 = arith.addf %34, %35 : vector<8x8xf32>
    %cst_32 = arith.constant dense<0.000000e+00> : vector<8x32xf32>
    %37 = tpu.matmul %7, %11, %cst_32 {dimension_numbers = #tpu.dot_dimension_numbers<[1], [0], [0], [1], [0, 0, 1, 1], [], []>} : vector<8x16xf32>, vector<16x32xf32>, vector<8x32xf32> -> vector<8x32xf32>
    %38 = vector.broadcast %18 : vector<1x32xf32> to vector<8x32xf32>
    %39 = arith.addf %37, %38 : vector<8x32xf32>
    %cst_33 = arith.constant 0.000000e+00 : f32
    %40 = vector.broadcast %cst_33 : f32 to vector<8x32xf32>
    %41 = arith.maximumf %39, %40 : vector<8x32xf32>
    %cst_34 = arith.constant dense<0.000000e+00> : vector<8x32xf32>
    %42 = tpu.matmul %41, %12, %cst_34 {dimension_numbers = #tpu.dot_dimension_numbers<[1], [0], [0], [1], [0, 0, 1, 1], [], []>} : vector<8x32xf32>, vector<32x32xf32>, vector<8x32xf32> -> vector<8x32xf32>
    %cst_35 = arith.constant dense<0.000000e+00> : vector<8x32xf32>
    %43 = tpu.matmul %36, %13, %cst_35 {dimension_numbers = #tpu.dot_dimension_numbers<[1], [0], [0], [1], [0, 0, 1, 1], [], []>} : vector<8x8xf32>, vector<8x32xf32>, vector<8x32xf32> -> vector<8x32xf32>
    %44 = arith.addf %42, %43 : vector<8x32xf32>
    %45 = vector.broadcast %19 : vector<1x32xf32> to vector<8x32xf32>
    %46 = arith.addf %44, %45 : vector<8x32xf32>
    %cst_36 = arith.constant 0.000000e+00 : f32
    %47 = vector.broadcast %cst_36 : f32 to vector<8x32xf32>
    %48 = arith.maximumf %46, %47 : vector<8x32xf32>
    %cst_37 = arith.constant dense<0.000000e+00> : vector<8x128xf32>
    %49 = tpu.matmul %48, %14, %cst_37 {dimension_numbers = #tpu.dot_dimension_numbers<[1], [0], [0], [1], [0, 0, 1, 1], [], []>} : vector<8x32xf32>, vector<32x128xf32>, vector<8x128xf32> -> vector<8x128xf32>
    %50 = vector.broadcast %20 : vector<1x128xf32> to vector<8x128xf32>
    %51 = arith.addf %49, %50 : vector<8x128xf32>
    %c0_38 = arith.constant 0 : index
    %c0_39 = arith.constant 0 : index
    %c0_40 = arith.constant 0 : index
    %52 = vector.load %arg4[%c0_38, %c0_39, %c0_40] : memref<1x8x128xf32, #tpu.memory_space<vmem>>, vector<1x8x128xf32>
    %53 = vector.shape_cast %52 : vector<1x8x128xf32> to vector<8x128xf32>
    %54 = vector.shape_cast %51 : vector<8x128xf32> to vector<1x8x128xf32>
    tpu.vector_store %arg4[%c0_38, %c0_39, %c0_40], %54 {strides = array<i32>} : memref<1x8x128xf32, #tpu.memory_space<vmem>>, vector<1x8x128xf32>,
    return
  }
  func.func @transform_0(%arg0: i32) -> (i32, i32, i32) {
    %c0_i32 = arith.constant 0 : i32
    %c0_i32_0 = arith.constant 0 : i32
    %c0_i32_1 = arith.constant 0 : i32
    return %arg0, %c0_i32, %c0_i32_0 : i32, i32, i32
  }
  func.func @transform_1(%arg0: i32) -> (i32, i32) {
    %c0_i32 = arith.constant 0 : i32
    %c0_i32_0 = arith.constant 0 : i32
    %c0_i32_1 = arith.constant 0 : i32
    return %c0_i32, %c0_i32_0 : i32, i32
  }
  func.func @transform_2(%arg0: i32) -> (i32, i32) {
    %c0_i32 = arith.constant 0 : i32
    %c0_i32_0 = arith.constant 0 : i32
    %c0_i32_1 = arith.constant 0 : i32
    return %c0_i32, %c0_i32_0 : i32, i32
  }
  func.func @transform_3(%arg0: i32) -> (i32, i32, i32) {
    %c0_i32 = arith.constant 0 : i32
    %c0_i32_0 = arith.constant 0 : i32
    %c0_i32_1 = arith.constant 0 : i32
    return %arg0, %c0_i32, %c0_i32_0 : i32, i32, i32
  }
}

</mosaic_0001>

<bundles_post_ra>
// kernel: tpu_custom_call.1
= control target key start
LH: loop header
LB: loop body
LE: loop exit
PB: predicated region body
PF: predicated region fallthrough
CT: control target
= control target key end

     0   :  { %8 = vsyncpa [#allocation3], 0  ;;  %s1219_s0 = inlined_call_operand.hbm [shape: f32[1,32,128], index: 0, kind: input, shape index: {}]   ;;  %s1220_s1 = inlined_call_operand.hbm [shape: f32[128,128], index: 1, kind: input, shape index: {}]   ;;  %s1221_s2 = inlined_call_operand.hbm [shape: f32[8,128], index: 2, kind: input, shape index: {}]   ;;  %s1222_s3 = inlined_call_operand.hbm [shape: f32[1,8,128], index: 3, kind: output, shape index: {}]  }
   0x1   :  { %9 = vsyncpa [#allocation6], 0 }
   0x2   :  { %10 = vsyncpa [#allocation4], 0  ;;  %s1093_s12 = smov [#allocation5]   ;;  %s1094_s14 = smov [#allocation2]  }
   0x3   :  { %s28_s13 = sshll.u32 %s1093_s12, 4  ;;  %s16_s15 = sshll.u32 %s1094_s14, 4  ;;  %s29_s13 = int_to_ptr.vmem [resolvable:$true] %s28_s13  ;;  %s1122_s15 = int_to_ptr.vmem [resolvable:$true] %s16_s15 }
   0x4   :  { %s999_s18 = scalar_lea.hbm %s1220_s1, 2048 }
   0x5   :  { %p1000_p0 = scmp.ne.s32.totalorder %s1220_s1, %s999_s18  ;;  %p1003_p1 = scmp.lt.u32.totalorder %s999_s18, %s1220_s1 }
   0x7   :  { %p1005_p2 = pnand %p1003_p1, %p1000_p0 }
   0x9   :  { %1008 = shalt.err (!%p1005_p2)
}
   0xa   :  { %s1009_s23 = scalar_lea.vmem %s29_s13, 2048  ;;  %p1014_p4 = scmp.lt.s32.totalorder %s29_s13, %s29_s13 }
   0xb   :  { %p1010_p3 = scmp.ne.s32.totalorder %s29_s13, %s1009_s23  ;;  %p1015_p5 = scmp.lt.s32.totalorder %s1009_s23, %s1009_s23 }
   0xd   :  { %p1016_p6 = por %p1015_p5, %p1014_p4 }
   0xf   :  { %p1017_p7 = pnand %p1016_p6, %p1010_p3 }
  0x11   :  { %1020 = shalt.err (!%p1017_p7)
}
  0x12   :  { %s1095_s24 = smov 128   ;;  %s1096_s25 = smov 8  }
  0x13   :  { %34 = dma.hbm_to_vmem [thread:$0]  %s1220_s1, 2048, %s29_s13, [#allocation6], %s1095_s24, %s1095_s24, %s1096_s25  }
  0x14   :  { %s1021_s30 = scalar_lea.hbm %s1219_s0, 512 }
  0x15   :  { %p1022_p8 = scmp.ne.s32.totalorder %s1219_s0, %s1021_s30  ;;  %p1025_p9 = scmp.lt.u32.totalorder %s1021_s30, %s1219_s0 }
  0x17   :  { %p1027_p10 = pnand %p1025_p9, %p1022_p8 }
  0x19   :  { %1030 = shalt.err (!%p1027_p10)
}
  0x1a   :  { %s1031_s8 = scalar_lea.vmem %s1122_s15, 512  ;;  %p1036_p12 = scmp.lt.s32.totalorder %s1122_s15, %s1122_s15 }
  0x1b   :  { %p1032_p11 = scmp.ne.s32.totalorder %s1122_s15, %s1031_s8  ;;  %p1037_p13 = scmp.lt.s32.totalorder %s1031_s8, %s1031_s8 }
  0x1d   :  { %p1038_p0 = por %p1037_p13, %p1036_p12 }
  0x1f   :  { %p1039_p1 = pnand %p1038_p0, %p1032_p11 }
  0x21   :  { %1042 = shalt.err (!%p1039_p1)
}
  0x22   :  { %22 = dma.hbm_to_vmem [thread:$0]  %s1219_s0, 512, %s1122_s15, [#allocation3], %s1095_s24, %s1095_s24, %s1096_s25  }
  0x23   :  { %s1097_s10 = smov [#allocation7]   ;;  %s1043_s14 = scalar_lea.hbm %s1221_s2, 128 }
  0x24   :  { %s41_s11 = sshll.u32 %s1097_s10, 4  ;;  %p1044_p2 = scmp.ne.s32.totalorder %s1221_s2, %s1043_s14  ;;  %s42_s11 = int_to_ptr.vmem [resolvable:$true] %s41_s11 }
  0x25   :  { %p1047_p3 = scmp.lt.u32.totalorder %s1043_s14, %s1221_s2 }
  0x27   :  { %p1049_p4 = pnand %p1047_p3, %p1044_p2 }
  0x29   :  { %1052 = shalt.err (!%p1049_p4)
}
  0x2a   :  { %s1053_s20 = scalar_lea.vmem %s42_s11, 128  ;;  %p1058_p6 = scmp.lt.s32.totalorder %s42_s11, %s42_s11 }
  0x2b   :  { %p1054_p5 = scmp.ne.s32.totalorder %s42_s11, %s1053_s20  ;;  %p1059_p7 = scmp.lt.s32.totalorder %s1053_s20, %s1053_s20 }
  0x2d   :  { %p1060_p8 = por %p1059_p7, %p1058_p6 }
  0x2f   :  { %p1061_p9 = pnand %p1060_p8, %p1054_p5 }
  0x31   :  { %1064 = shalt.err (!%p1061_p9)
}
  0x32   :  { %44 = dma.hbm_to_vmem [thread:$0]  %s1221_s2, 128, %s42_s11, [#allocation6]  }
  0x33   :  { %1087 = dma.done.wait [#allocation3], 512  }
  0x34   :  { %1088 = vsyncadd [#allocation3], 4294966784 }
  0x35   :  { %1089 = dma.done.wait [#allocation6], 2176  }
  0x36   :  { %1090 = vsyncadd [#allocation6], 4294965120  ;;  %v1098_v0 = vmov 0.0   ;;  %vm1099_vm0 = vmmov 0   ;;  %vm80_vm1 = vcmask 64512   ;;  %v58_v1 = vld [vmem:[#allocation5] sm:$0xff] }
  0x37   :  { %901 = vmatprep.subr.mxu0 %v1098_v0  ;;  %903 = vmatprep.mubr.msk.f32.mxu0 %vm1099_vm0, %v1098_v0  ;;  %v56_v2 = vld [vmem:[#allocation2 + $0x10] sm:$0xff]  ;;  %v54_v3 = vld [vmem:[#allocation2] sm:$0xff]  ;;  %v59_v6 = vld [vmem:[#allocation5 + $0x8] sm:$0xff]  ;;  %v1100_v9 = vmov 0.0|0.0   ;;  %vm232_vm2 = vcmask 130048   ;;  %vm682_vm3 = vcmask 261120  }
  0x38   :  { %906 = vmatprep.subr.mxu1 %v1098_v0  ;;  %908 = vmatprep.mubr.msk.f32.mxu1 %vm1099_vm0, %v1098_v0  ;;  %v60_v7 = vld [vmem:[#allocation5 + $0x10] sm:$0xff]  ;;  %v857_v10 = vld [vmem:[#allocation7] ss:$0 sm:$0xff]  ;;  %v61_v17 = vld [vmem:[#allocation5 + $0x18] sm:$0xff]  ;;  %s1101_s2 = smov [#allocation8]  }
  0x39   :  { %902 = vmatpush3.msra.mxu0 %v58_v1  ;;  %v970_v8 = vpack.c.bf16 %v60_v7, %v59_v6  ;;  %v62_v18 = vld [vmem:[#allocation5 + $0x20] sm:$0xff]  ;;  %v63_v22 = vld [vmem:[#allocation5 + $0x28] sm:$0xff]  ;;  %v64_v23 = vld [vmem:[#allocation5 + $0x30] sm:$0xff]  ;;  %s846_s21 = sshll.u32 %s1101_s2, 4  ;;  %s847_s21 = int_to_ptr.vmem [resolvable:$true] %s846_s21 }
  0x3a   :  { %904 = vmatmul.mubr.msk.f32.vlgmr.msra.gmra.mrb[0].mxu0 %vm80_vm1, %v56_v2  ;;  %969 = vmatprep.subr.bf16.mxu0 %v1100_v9  ;;  %v973_v19 = vpack.c.bf16 %v62_v18, %v61_v17  ;;  %v860_v20 = vld [vmem:[#allocation7 + $0x1] ss:$0 sm:$0xff]  ;;  %v55_v27 = vld [vmem:[#allocation2 + $0x8] sm:$0xff]  ;;  %v976_v28 = vpack.c.bf16 %v64_v23, %v63_v22  ;;  %v57_v29 = vld [vmem:[#allocation2 + $0x18] sm:$0xff]  ;;  %s1065_s22 = scalar_lea.vmem %s847_s21, 128  ;;  %p1070_p11 = scmp.lt.s32.totalorder %s847_s21, %s847_s21 }
  0x3b   :  { %915 = vmatprep.mubr.msk.f32.mxu0 %vm1099_vm0, %v1098_v0  ;;  %971 = vmatpush3.bf16.msra.mxu0 %v970_v8  ;;  %v65_v30 = vld [vmem:[#allocation5 + $0x38] sm:$0xff]  ;;  %v66_v31 = vld [vmem:[#allocation5 + $0x40] sm:$0xff]  ;;  %v67_v39 = vld [vmem:[#allocation5 + $0x48] sm:$0xff]  ;;  %p1066_p10 = scmp.ne.s32.totalorder %s847_s21, %s1065_s22  ;;  %p1071_p12 = scmp.lt.s32.totalorder %s1065_s22, %s1065_s22 }
  0x3c   :  { %923 = vmatprep.subr.mxu0 %v1098_v0  ;;  %v979_v32 = vpack.c.bf16 %v66_v31, %v65_v30  ;;  %v865_v37 = vld [vmem:[#allocation7 + $0x3] ss:$0 sm:$0xff]  ;;  %v68_v40 = vld [vmem:[#allocation5 + $0x50] sm:$0xff]  ;;  %v69_v43 = vld [vmem:[#allocation5 + $0x58] sm:$0xff] }
  0x3d   :  { %v982_v41 = vpack.c.bf16 %v68_v40, %v67_v39  ;;  %v863_v44 = vld [vmem:[#allocation7 + $0x2] ss:$0 sm:$0xff]  ;;  %v71_v49 = vld [vmem:[#allocation5 + $0x68] sm:$0xff]  ;;  %v72_v53 = vld [vmem:[#allocation5 + $0x70] sm:$0xff]  ;;  %p1072_p13 = por %p1071_p12, %p1070_p11 }
  0x3e   :  { %v70_v48 = vld [vmem:[#allocation5 + $0x60] sm:$0xff]  ;;  %v73_v54 = vld [vmem:[#allocation5 + $0x78] sm:$0xff] }
  0x3f   :  { %v985_v50 = vpack.c.bf16 %v71_v49, %v70_v48  ;;  %v988_v55 = vpack.c.bf16 %v73_v54, %v72_v53  ;;  %v869_v57 = vld [vmem:[#allocation7 + $0x4] ss:$0 sm:$0xff]  ;;  %v870_v62 = vld [vmem:[#allocation7 + $0x5] ss:$0 sm:$0xff]  ;;  %p1073_p0 = pnand %p1072_p13, %p1066_p10 }
 0x10d   :  { %v150_v4 = vpop.f32.mrb[0].mxu0 }
 0x10e   :  { %v905_v5 = vpop.f32.mrb[1].mxu0  ;;  %907 = vmatpush3.msra.mxu1 %v150_v4 }
 0x10f   :  { %909 = vmatmul.mubr.msk.f32.vlgmr.msra.gmra.mrb[0].mxu1 %vm80_vm1, %v54_v3  ;;  %918 = vmatprep.subr.mxu1 %v1098_v0 }
 0x110   :  { %920 = vmatprep.mubr.msk.f32.mxu1 %vm1099_vm0, %v1098_v0 }
 0x1e2   :  { %v227_v11 = vpop.f32.mrb[0].mxu1 }
 0x1e3   :  { %v228_v12 = vadd.f32 %v857_v10, %v227_v11  ;;  %v910_v13 = vpop.f32.mrb[1].mxu1 }
 0x1e5   :  { %v231_v14 = vmax.f32 %v228_v12, 0.0 }
 0x1e7   :  { %916 = vmatmul.mubr.msk.f32.vlgmr.msra.gmra.mrb[2].mxu0 %vm232_vm2, %v231_v14 }
 0x1e8   :  { %925 = vmatprep.mubr.msk.f32.mxu0 %vm1099_vm0, %v1098_v0 }
 0x2ba   :  { %v302_v15 = vpop.f32.mrb[2].mxu0 }
 0x2bb   :  { %v917_v16 = vpop.f32.mrb[3].mxu0  ;;  %919 = vmatpush3.msra.mxu1 %v302_v15 }
 0x2bc   :  { %921 = vmatmul.mubr.msk.f32.vlgmr.msra.gmra.mrb[2].mxu1 %vm80_vm1, %v54_v3  ;;  %972 = vmatprep.subr.bf16.mxu1 %v1100_v9 }
 0x2bd   :  { %932 = vmatprep.mubr.msk.f32.mxu1 %vm1099_vm0, %v1098_v0  ;;  %974 = vmatpush3.bf16.msra.mxu1 %v973_v19 }
 0x2be   :  { %942 = vmatprep.subr.mxu1 %v1098_v0 }
 0x38f   :  { %v376_v21 = vpop.f32.mrb[2].mxu1 }
 0x390   :  { %v377_v24 = vadd.f32 %v860_v20, %v376_v21  ;;  %v922_v25 = vpop.f32.mrb[3].mxu1 }
 0x392   :  { %v380_v26 = vmax.f32 %v377_v24, 0.0 }
 0x394   :  { %924 = vmatpush3.msra.mxu0 %v380_v26 }
 0x395   :  { %926 = vmatmul.mubr.msk.f32.vlgmr.msra.gmra.mrb[4].mxu0 %vm80_vm1, %v55_v27  ;;  %975 = vmatprep.subr.bf16.mxu0 %v1100_v9 }
 0x396   :  { %977 = vmatpush3.bf16.msra.mxu0 %v976_v28  ;;  %939 = vmatprep.mubr.msk.f32.mxu0 %vm1099_vm0, %v1098_v0 }
 0x397   :  { %978 = vmatprep.subr.bf16.mxu0 %v1100_v9 }
 0x399   :  { %940 = vmatmul.mubr.msk.f32.vlgmr.msra.gmra.mrb[6].mxu0 %vm232_vm2, %v57_v29 }
 0x39a   :  { %955 = vmatprep.mubr.msk.f32.mxu0 %vm1099_vm0, %v1098_v0  ;;  %980 = vmatpush3.bf16.msra.mxu0 %v979_v32 }
 0x39b   :  { %981 = vmatprep.subr.bf16.mxu0 %v1100_v9 }
 0x39e   :  { %983 = vmatpush3.bf16.msra.mxu0 %v982_v41 }
 0x468   :  { %v450_v33 = vpop.f32.mrb[4].mxu0 }
 0x469   :  { %v927_v34 = vpop.f32.mrb[5].mxu0  ;;  %933 = vmatmul.mubr.msk.f32.vlgmr.msra.gmra.mrb[4].mxu1 %vm232_vm2, %v450_v33 }
 0x46a   :  { %944 = vmatprep.mubr.msk.f32.mxu1 %vm1099_vm0, %v1098_v0  ;;  %943 = vmatpush3.msra.mxu1 %v69_v43 }
 0x46b   :  { %984 = vmatprep.subr.bf16.mxu1 %v1100_v9 }
 0x46c   :  { %v604_v35 = vpop.f32.mrb[6].mxu0 }
 0x46d   :  { %v941_v36 = vpop.f32.mrb[7].mxu0  ;;  %v605_v38 = vadd.f32 %v865_v37, %v604_v35 }
 0x46f   :  { %v608_v42 = vmax.f32 %v605_v38, 0.0 }
 0x471   :  { %956 = vmatmul.mubr.msk.f32.vlgmr.msra.gmra.mrb[8].mxu0 %vm682_vm3, %v608_v42 }
 0x53c   :  { %v527_v45 = vpop.f32.mrb[4].mxu1 }
 0x53d   :  { %v528_v46 = vadd.f32 %v863_v44, %v527_v45  ;;  %v934_v47 = vpop.f32.mrb[5].mxu1 }
 0x53f   :  { %945 = vmatmul.mubr.msk.f32.vlgmr.msra.gmra.mrb[6].mxu1 %vm80_vm1, %v528_v46 }
 0x540   :  { %966 = vmatprep.mubr.msk.f32.mxu1 %vm1099_vm0, %v1098_v0  ;;  %986 = vmatpush3.bf16.msra.mxu1 %v985_v50 }
 0x541   :  { %987 = vmatprep.subr.bf16.mxu1 %v1100_v9 }
 0x544   :  { %v752_v51 = vpop.f32.mrb[8].mxu0  ;;  %989 = vmatpush3.bf16.msra.mxu1 %v988_v55 }
 0x545   :  { %v957_v52 = vpop.f32.mrb[9].mxu0 }
 0x612   :  { %v678_v56 = vpop.f32.mrb[6].mxu1 }
 0x613   :  { %v753_v58 = vadd.f32 %v752_v51, %v678_v56  ;;  %v946_v59 = vpop.f32.mrb[7].mxu1 }
 0x615   :  { %v760_v60 = vadd.f32 %v869_v57, %v753_v58 }
 0x617   :  { %v761_v61 = vmax.f32 %v760_v60, 0.0 }
 0x619   :  { %967 = vmatmul.mubr.msk.f32.vlgmr.msra.gmra.mrb[8].mxu1 %vm682_vm3, %v761_v61 }
 0x6ec   :  { %v835_v63 = vpop.f32.mrb[8].mxu1 }
 0x6ed   :  { %v836_v0 = vadd.f32 %v870_v62, %v835_v63  ;;  %v968_v1 = vpop.f32.mrb[9].mxu1 }
 0x6ef   :  { %839 = vst [vmem:[#allocation8] sm:$0xff] %v836_v0 }
 0x6f0   :  { %1076 = shalt.err (!%p1073_p0)
}
 0x6f1   :  { %s1077_s25 = scalar_lea.hbm %s1222_s3, 128 }
 0x6f2   :  { %p1078_p1 = scmp.ne.s32.totalorder %s1222_s3, %s1077_s25  ;;  %p1081_p2 = scmp.lt.u32.totalorder %s1077_s25, %s1222_s3 }
 0x6f4   :  { %p1083_p3 = pnand %p1081_p2, %p1078_p1 }
 0x6f6   :  { %1086 = shalt.err (!%p1083_p3)
}
 0x6f7   :  { %849 = dma.vmem_to_hbm [thread:$0]  %s847_s21, 128, %s1222_s3, [#allocation4]  }
 0x6f8   :  { %1091 = dma.done.wait [#allocation4], 128  }
 0x6f9   :  { %1092 = vsyncadd [#allocation4], 4294967168 }
 0x6fa   :  { %853 = vsyncpa [#allocation3], 1 }
 0x6fb   :  { %854 = vsyncpa [#allocation6], 1 }
 0x6fc   :  { %855 = vsyncpa [#allocation4], 1 }

</bundles_post_ra>
